<compile_context>
chip_gen: v7x
topology: tpu7x:2x2x1
jax: 0.10.0
libtpu: 0.0.40
codegen_flags: <defaults>
</compile_context>

<pallas_src>
import jax
import jax.numpy as jnp
from jax.experimental import pallas as pl
from jax.experimental.pallas import tpu as pltpu


_LANE = 128          # lane width (last-dim tile)
_SUBLANE = 8         # sublane width (second-to-last-dim tile)
_BATCH_TILE = 512    # batch tile rows for the grid path


def _round_up(n: int, m: int) -> int:
    return ((n + m - 1) // m) * m


def fused_linear_kernel(x_ref, w_ref, b_ref, o_ref):
    # Single bf16 MXU matmul with f32 accumulation, then f32 bias add.
    acc = jnp.dot(x_ref[...], w_ref[...], preferred_element_type=jnp.float32)
    o_ref[...] = (acc + b_ref[...]).astype(o_ref.dtype)


def linear_model_forward(x, w1, b1, w2, b2):
    """Pallas equivalent of LinearModel.forward: linear2(linear1(x)).

    x:  (B, In) f32
    w1: (In, 60) f32, b1: (1, 60) f32
    w2: (60, Out) f32, b2: (1, Out) f32
    """
    B, In = x.shape
    Out = w2.shape[1]

    # ---- Algebraic fusion of the two affine layers (no nonlinearity between). ----
    w = jnp.dot(w1, w2)              # (In, Out)  f32
    b = jnp.dot(b1, w2) + b2         # (1, Out)   f32

    # ---- Lane-dense output: pad Out up to a multiple of 128. ----
    out_p = _round_up(Out, _LANE)
    w = jnp.pad(w, ((0, 0), (0, out_p - Out)))
    b = jnp.pad(b, ((0, 0), (0, out_p - Out)))

    # ---- bf16 MXU operands (accumulate in f32 inside the kernel). ----
    x_bf = x.astype(jnp.bfloat16)
    w_bf = w.astype(jnp.bfloat16)

    if B <= _BATCH_TILE:
        # Single-shot, gridless call: no per-step grid/pipeline bookkeeping.
        b_p = _round_up(B, _SUBLANE)
        x_bf = jnp.pad(x_bf, ((0, b_p - B), (0, 0)))
        cost = pl.CostEstimate(
            flops=2 * b_p * In * out_p,
            transcendentals=0,
            bytes_accessed=(x_bf.size * 2 + w_bf.size * 2
                            + b.size * 4 + b_p * out_p * 4))
        out = pl.pallas_call(
            fused_linear_kernel,
            out_shape=jax.ShapeDtypeStruct((b_p, out_p), jnp.float32),
            in_specs=[
                pl.BlockSpec(memory_space=pltpu.MemorySpace.VMEM),
                pl.BlockSpec(memory_space=pltpu.MemorySpace.VMEM),
                pl.BlockSpec(memory_space=pltpu.MemorySpace.VMEM),
            ],
            out_specs=pl.BlockSpec(memory_space=pltpu.MemorySpace.VMEM),
            cost_estimate=cost,
        )(x_bf, w_bf, b)
    else:
        # Batch-tiled path: "parallel" batch axis (sharded across v7x's two TCs),
        # weights/bias stay VMEM-resident across steps via constant index maps.
        b_p = _round_up(B, _BATCH_TILE)
        x_bf = jnp.pad(x_bf, ((0, b_p - B), (0, 0)))
        grid = (b_p // _BATCH_TILE,)
        cost = pl.CostEstimate(
            flops=2 * b_p * In * out_p,
            transcendentals=0,
            bytes_accessed=(x_bf.size * 2 + w_bf.size * 2
                            + b.size * 4 + b_p * out_p * 4))
        out = pl.pallas_call(
            fused_linear_kernel,
            out_shape=jax.ShapeDtypeStruct((b_p, out_p), jnp.float32),
            grid=grid,
            in_specs=[
                pl.BlockSpec((_BATCH_TILE, In), lambda i: (i, 0)),
                pl.BlockSpec((In, out_p), lambda i: (0, 0)),
                pl.BlockSpec((1, out_p), lambda i: (0, 0)),
            ],
            out_specs=pl.BlockSpec((_BATCH_TILE, out_p), lambda i: (i, 0)),
            compiler_params=pltpu.CompilerParams(
                dimension_semantics=("parallel",)),
            cost_estimate=cost,
        )(x_bf, w_bf, b)

    # Strip batch/lane padding back off.
    return out[:B, :Out]


def init_linear_params(key, in_features, out_features):
    # Deterministic init mimicking nn.Linear: U(-1/sqrt(in), 1/sqrt(in)).
    kw, kb = jax.random.split(key)
    bound = 1.0 / jnp.sqrt(jnp.float32(in_features))
    # Stored as (in, out): transpose of PyTorch's (out, in) weight layout.
    w = jax.random.uniform(kw, (in_features, out_features),
                           jnp.float32, -bound, bound)
    b = jax.random.uniform(kb, (1, out_features), jnp.float32, -bound, bound)
    return w, b


if __name__ == "__main__":
    key = jax.random.PRNGKey(0)
    k_x, k_l1, k_l2, k_xl = jax.random.split(key, 4)

    batch = 8
    input_size = 32
    hidden = 60          # fixed by the module definition: nn.Linear(input_size, 60)
    output_size = 16

    x = jax.random.normal(k_x, (batch, input_size), jnp.float32)
    w1, b1 = init_linear_params(k_l1, input_size, hidden)
    w2, b2 = init_linear_params(k_l2, hidden, output_size)

    out = linear_model_forward(x, w1, b1, w2, b2)
    out = jax.block_until_ready(out)

    # Reference: plain-JAX f32 version of the PyTorch forward (two linears).
    ref = (x @ w1 + b1) @ w2 + b2
    assert out.shape == (batch, output_size)
    # bf16 MXU operands -> loosened tolerance vs the pure-f32 reference.
    assert jnp.allclose(out, ref, atol=2e-2, rtol=2e-2)

    # Also exercise the batch-tiled ("parallel" grid) path.
    x_large = jax.random.normal(k_xl, (1024, input_size), jnp.float32)
    out_large = jax.block_until_ready(
        linear_model_forward(x_large, w1, b1, w2, b2))
    ref_large = (x_large @ w1 + b1) @ w2 + b2
    assert out_large.shape == (1024, output_size)
    assert jnp.allclose(out_large, ref_large, atol=2e-2, rtol=2e-2)

    print("KERNEL_OK")
</pallas_src>

<mosaic_0001>
module attributes {stable_mosaic.version = 11 : i64} {
  func.func @fused_linear_kernel(%arg0: memref<8x32xbf16, #tpu.memory_space<vmem>>, %arg1: memref<32x128xbf16, #tpu.memory_space<vmem>>, %arg2: memref<1x128xf32, #tpu.memory_space<vmem>>, %arg3: memref<8x128xf32, #tpu.memory_space<vmem>>) attributes {dimension_semantics = [], scalar_prefetch = 0 : i64, scratch_operands = 0 : i64, tpu.core_type = #tpu.core_type<tc>} {
    %c0 = arith.constant 0 : index
    %c0_0 = arith.constant 0 : index
    %0 = vector.load %arg0[%c0, %c0_0] : memref<8x32xbf16, #tpu.memory_space<vmem>>, vector<8x32xbf16>
    %c0_1 = arith.constant 0 : index
    %c0_2 = arith.constant 0 : index
    %1 = vector.load %arg1[%c0_1, %c0_2] : memref<32x128xbf16, #tpu.memory_space<vmem>>, vector<32x128xbf16>
    %cst = arith.constant dense<0.000000e+00> : vector<8x128xf32>
    %2 = tpu.matmul %0, %1, %cst {dimension_numbers = #tpu.dot_dimension_numbers<[1], [0], [0], [1], [0, 0, 1, 1], [], []>} : vector<8x32xbf16>, vector<32x128xbf16>, vector<8x128xf32> -> vector<8x128xf32>
    %c0_3 = arith.constant 0 : index
    %c0_4 = arith.constant 0 : index
    %3 = vector.load %arg2[%c0_3, %c0_4] : memref<1x128xf32, #tpu.memory_space<vmem>>, vector<1x128xf32>
    %4 = vector.broadcast %3 : vector<1x128xf32> to vector<8x128xf32>
    %5 = arith.addf %2, %4 : vector<8x128xf32>
    %c0_5 = arith.constant 0 : index
    %c0_6 = arith.constant 0 : index
    %6 = vector.load %arg3[%c0_5, %c0_6] : memref<8x128xf32, #tpu.memory_space<vmem>>, vector<8x128xf32>
    tpu.vector_store %arg3[%c0_5, %c0_6], %5 {strides = array<i32>} : memref<8x128xf32, #tpu.memory_space<vmem>>, vector<8x128xf32>,
    return
  }
}

</mosaic_0001>

<bundles_post_ra>
// kernel: tpu_custom_call.1
= control target key start
LH: loop header
LB: loop body
LE: loop exit
PB: predicated region body
PF: predicated region fallthrough
CT: control target
= control target key end

     0   :  { %8 = vsyncpa [#allocation3], 0  ;;  %s296_s0 = inlined_call_operand.hbm [shape: bf16[8,32], index: 0, kind: input, shape index: {}]   ;;  %s297_s1 = inlined_call_operand.hbm [shape: bf16[32,128], index: 1, kind: input, shape index: {}]   ;;  %s298_s2 = inlined_call_operand.vmem [shape: f32[1,128], index: 2, kind: input, shape index: {}]   ;;  %s299_s3 = inlined_call_operand.hbm [shape: f32[8,128], index: 3, kind: output, shape index: {}]  }
   0x1   :  { %9 = vsyncpa [#allocation6], 0 }
   0x2   :  { %10 = vsyncpa [#allocation4], 0  ;;  %s223_s12 = smov [#allocation2]   ;;  %s224_s14 = smov [#allocation5]  }
   0x3   :  { %s17_s13 = sshll.u32 %s223_s12, 4  ;;  %s26_s15 = sshll.u32 %s224_s14, 4  ;;  %s18_s13 = int_to_ptr.vmem [resolvable:$true] %s17_s13  ;;  %s250_s15 = int_to_ptr.vmem [resolvable:$true] %s26_s15 }
   0x4   :  { %s151_s18 = scalar_lea.hbm %s296_s0, 64 }
   0x5   :  { %p152_p0 = scmp.ne.s32.totalorder %s296_s0, %s151_s18  ;;  %p155_p1 = scmp.lt.u32.totalorder %s151_s18, %s296_s0 }
   0x7   :  { %p157_p2 = pnand %p155_p1, %p152_p0 }
   0x9   :  { %160 = shalt.err (!%p157_p2)
}
   0xa   :  { %s161_s23 = scalar_lea.vmem %s18_s13, 64  ;;  %p166_p4 = scmp.lt.s32.totalorder %s18_s13, %s18_s13 }
   0xb   :  { %p162_p3 = scmp.ne.s32.totalorder %s18_s13, %s161_s23  ;;  %p167_p5 = scmp.lt.s32.totalorder %s161_s23, %s161_s23 }
   0xd   :  { %p168_p6 = por %p167_p5, %p166_p4 }
   0xf   :  { %p169_p7 = pnand %p168_p6, %p162_p3 }
  0x11   :  { %172 = shalt.err (!%p169_p7)
}
  0x12   :  { %20 = dma.hbm_to_vmem [thread:$0]  %s296_s0, 64, %s18_s13, [#allocation3]  }
  0x13   :  { %s173_s28 = scalar_lea.hbm %s297_s1, 256 }
  0x14   :  { %p174_p8 = scmp.ne.s32.totalorder %s297_s1, %s173_s28  ;;  %p177_p9 = scmp.lt.u32.totalorder %s173_s28, %s297_s1 }
  0x16   :  { %p179_p10 = pnand %p177_p9, %p174_p8 }
  0x18   :  { %182 = shalt.err (!%p179_p10)
}
  0x19   :  { %s183_s6 = scalar_lea.vmem %s250_s15, 256  ;;  %p188_p12 = scmp.lt.s32.totalorder %s250_s15, %s250_s15 }
  0x1a   :  { %p184_p11 = scmp.ne.s32.totalorder %s250_s15, %s183_s6  ;;  %p189_p13 = scmp.lt.s32.totalorder %s183_s6, %s183_s6 }
  0x1c   :  { %p190_p0 = por %p189_p13, %p188_p12 }
  0x1e   :  { %p191_p1 = pnand %p190_p0, %p184_p11 }
  0x20   :  { %194 = shalt.err (!%p191_p1)
}
  0x21   :  { %s225_s0 = smov 64   ;;  %s226_s7 = smov 4  }
  0x22   :  { %32 = dma.hbm_to_vmem [thread:$0]  %s297_s1, 256, %s250_s15, [#allocation6], %s225_s0, %s225_s0, %s226_s7  }
  0x23   :  { %217 = dma.done.wait [#allocation3], 64  }
  0x24   :  { %218 = vsyncadd [#allocation3], 4294967232 }
  0x25   :  { %219 = dma.done.wait [#allocation6], 256  }
  0x26   :  { %220 = vsyncadd [#allocation6], 4294967040  ;;  %v227_v0 = vmov 0.0   ;;  %vm228_vm0 = vmmov 0   ;;  %v149_v1 = vld [vmem:[#allocation5] sm:$0xff]   ;;  %v150_v2 = vld [vmem:[#allocation5 + $0x8] sm:$0xff]  }
  0x27   :  { %134 = vmatprep.subr.bf16.mxu0 %v227_v0  ;;  %138 = vmatprep.mubr.msk.bf16.mxu0 %vm228_vm0, %v227_v0  ;;  %v42_v3 = vld [vmem:[#allocation2] sm:$0xf]  ;;  %vm66_vm1 = vcmask 261120   ;;  %s229_s1 = smov [#allocation7]  }
  0x28   :  { %135 = vmatpush3.bf16.msra.mxu0 %v149_v1  ;;  %v127_v4 = vld [vmem:[%s298_s2] ss:$0 sm:$0xff]  ;;  %s117_s12 = sshll.u32 %s229_s1, 4  ;;  %s118_s12 = int_to_ptr.vmem [resolvable:$true] %s117_s12 }
  0x29   :  { %136 = vmatprep.subr.bf16.mxu0 %v227_v0  ;;  %s195_s13 = scalar_lea.vmem %s118_s12, 128  ;;  %p200_p3 = scmp.lt.s32.totalorder %s118_s12, %s118_s12 }
  0x2a   :  { %p196_p2 = scmp.ne.s32.totalorder %s118_s12, %s195_s13  ;;  %p201_p4 = scmp.lt.s32.totalorder %s195_s13, %s195_s13 }
  0x2c   :  { %137 = vmatpush3.bf16.msra.mxu0 %v150_v2  ;;  %p202_p5 = por %p201_p4, %p200_p3 }
  0x2e   :  { %p203_p6 = pnand %p202_p5, %p196_p2 }
  0x2f   :  { %139 = vmatmul.mubr.msk.bf16.vlgmr.msra.gmra.mrb[0].mxu0 %vm66_vm1, %v42_v3 }
 0x102   :  { %v104_v5 = vpop.f32.mrb[0].mxu0 }
 0x103   :  { %v105_v6 = vadd.f32 %v127_v4, %v104_v5  ;;  %v140_v7 = vpop.f32.mrb[1].mxu0 }
 0x104   :  { %v107_v8 = vpop.f32.mrb[2].mxu0 }
 0x105   :  { %110 = vst [vmem:[#allocation7] sm:$0xff] %v105_v6  ;;  %v141_v9 = vpop.f32.mrb[3].mxu0 }
 0x106   :  { %206 = shalt.err (!%p203_p6)
}
 0x107   :  { %s207_s2 = scalar_lea.hbm %s299_s3, 128 }
 0x108   :  { %p208_p7 = scmp.ne.s32.totalorder %s299_s3, %s207_s2  ;;  %p211_p8 = scmp.lt.u32.totalorder %s207_s2, %s299_s3 }
 0x10a   :  { %p213_p9 = pnand %p211_p8, %p208_p7 }
 0x10c   :  { %216 = shalt.err (!%p213_p9)
}
 0x10d   :  { %120 = dma.vmem_to_hbm [thread:$0]  %s118_s12, 128, %s299_s3, [#allocation4]  }
 0x10e   :  { %221 = dma.done.wait [#allocation4], 128  }
 0x10f   :  { %222 = vsyncadd [#allocation4], 4294967168 }
 0x110   :  { %124 = vsyncpa [#allocation3], 1 }
 0x111   :  { %125 = vsyncpa [#allocation6], 1 }
 0x112   :  { %126 = vsyncpa [#allocation4], 1 }

</bundles_post_ra>
